<compile_context>
chip_gen: v7x
topology: tpu7x:2x2x1
jax: 0.10.0
libtpu: 0.0.40
codegen_flags: <defaults>
</compile_context>

<pallas_src>
import jax
import jax.numpy as jnp
from jax.experimental import pallas as pl
from jax.experimental.pallas import tpu as pltpu


_TARGET_BLOCK_BYTES = 4 * 1024 * 1024   # input bytes per grid step
_ROW_TILE_THRESHOLD = 4 * 1024 * 1024   # plane size above which rows are tiled
_VMEM_LIMIT = 48 * 1024 * 1024          # leaves headroom inside v7x's 64 MiB


# --------------------------------------------------------------------------
# Kernels
# --------------------------------------------------------------------------
def _fd_kernel_plane(x_ref, out_ref):
    # x_ref:   VMEM (tb, h, w)
    # out_ref: VMEM (tb, 2, h-1, w-1)   (full valid-conv output, no padding)
    x = x_ref[...]
    h = x.shape[1]
    w = x.shape[2]
    left = x[:, : h - 1, : w - 1]
    # channel 0: vertical finite difference
    out_ref[:, 0, :, :] = left - x[:, 1:, : w - 1]
    # channel 1: horizontal finite difference
    # TODO(synk): pltpu.roll(x, w-1, axis=-1) would move the lane shift to the
    # otherwise-idle XLU; negligible here since the kernel is HBM-bound.
    out_ref[:, 1, :, :] = left - x[:, : h - 1, 1:]


def _fd_kernel_rows(x_ref, nxt_ref, out_ref):
    # Row-tiled variant (large planes).
    # x_ref:   VMEM (tb, R, w)      rows [r*R, r*R+R) of the plane
    # nxt_ref: VMEM (tb, 8, w)      8-row block starting at row (r+1)*R
    #                               (only its first row is used: the halo row)
    # out_ref: VMEM (tb, 2, R, w-1) output rows [r*R, r*R+R)
    x = x_ref[...]
    r = x.shape[1]
    w = x.shape[2]
    left = x[:, :, : w - 1]
    # channel 1: horizontal difference (fully within the block)
    out_ref[:, 1, :, :] = left - x[:, :, 1:]
    # channel 0: vertical difference; last row of the block needs the halo row
    out_ref[:, 0, : r - 1, :] = x[:, : r - 1, : w - 1] - x[:, 1:, : w - 1]
    out_ref[:, 0, r - 1:, :] = x[:, r - 1:, : w - 1] - nxt_ref[:, :1, : w - 1]


# --------------------------------------------------------------------------
# Tiling heuristics
# --------------------------------------------------------------------------
def _pick_tb(bc, h, w, itemsize, target=_TARGET_BLOCK_BYTES):
    """Planes per grid step: ~`target` bytes of input per step (big DMAs,
    per-step overhead amortized), ragged last block allowed, and an even
    number of steps preferred so v7x's two TensorCores split the work."""
    plane_bytes = h * w * itemsize
    tb = max(1, min(bc, target // max(plane_bytes, 1)))
    if -(-bc // tb) == 1 and bc >= 2:
        tb = -(-bc // 2)                      # at least 2 steps for 2 TCs
    if bc >= 2:
        for cand in range(tb, max(0, tb - 8), -1):
            if (-(-bc // cand)) % 2 == 0:     # prefer an even grid
                return cand
    return tb


def _pick_row_block(w, itemsize, target=_TARGET_BLOCK_BYTES):
    r = target // max(w * itemsize, 1)
    return max(8, (r // 8) * 8)               # multiple of 8 (sublane tiling)


# --------------------------------------------------------------------------
# pallas_call wrappers
# --------------------------------------------------------------------------
def _fd_whole_plane(x, tb):
    bc, h, w = x.shape
    grid = -(-bc // tb)
    itemsize = x.dtype.itemsize
    return pl.pallas_call(
        _fd_kernel_plane,
        out_shape=jax.ShapeDtypeStruct((bc, 2, h - 1, w - 1), x.dtype),
        grid_spec=pltpu.PrefetchScalarGridSpec(
            num_scalar_prefetch=0,
            grid=(grid,),
            in_specs=[pl.BlockSpec((tb, h, w), lambda n: (n, 0, 0))],
            out_specs=pl.BlockSpec((tb, 2, h - 1, w - 1),
                                   lambda n: (n, 0, 0, 0)),
        ),
        compiler_params=pltpu.CompilerParams(
            dimension_semantics=("parallel",),
            vmem_limit_bytes=_VMEM_LIMIT,
        ),
        cost_estimate=pl.CostEstimate(
            flops=2 * bc * (h - 1) * (w - 1),
            transcendentals=0,
            bytes_accessed=itemsize * bc * (h * w + 2 * (h - 1) * (w - 1)),
        ),
    )(x)


def _fd_row_tiled(x, row_block, tb=1):
    """Large-plane path: grid = (plane blocks, row blocks).  The 1-row halo
    needed by the vertical difference at each row-block boundary is fetched
    via a second BlockSpec on the same input (an 8-row block whose first row
    is row (r+1)*row_block); OOB / clamped fetches only feed output rows that
    lie past h-2 and are dropped by the masked writeback."""
    bc, h, w = x.shape
    assert row_block % 8 == 0
    r_grid = -(-(h - 1) // row_block)
    n_grid = -(-bc // tb)
    n8 = -(-h // 8)                    # number of 8-row blocks over the rows
    rb8 = row_block // 8
    itemsize = x.dtype.itemsize

    def x_map(n, r):
        return (n, r, 0)

    def nxt_map(n, r):
        return (n, jnp.minimum((r + 1) * rb8, n8 - 1), 0)

    def out_map(n, r):
        return (n, 0, r, 0)

    return pl.pallas_call(
        _fd_kernel_rows,
        out_shape=jax.ShapeDtypeStruct((bc, 2, h - 1, w - 1), x.dtype),
        grid_spec=pltpu.PrefetchScalarGridSpec(
            num_scalar_prefetch=0,
            grid=(n_grid, r_grid),
            in_specs=[
                pl.BlockSpec((tb, row_block, w), x_map),
                pl.BlockSpec((tb, 8, w), nxt_map),
            ],
            out_specs=pl.BlockSpec((tb, 2, row_block, w - 1), out_map),
        ),
        compiler_params=pltpu.CompilerParams(
            dimension_semantics=("parallel", "parallel"),
            vmem_limit_bytes=_VMEM_LIMIT,
        ),
        cost_estimate=pl.CostEstimate(
            flops=2 * bc * (h - 1) * (w - 1),
            transcendentals=0,
            bytes_accessed=itemsize * bc
            * (h * w + r_grid * 8 * w + 2 * (h - 1) * (w - 1)),
        ),
    )(x, x)


@jax.jit
def finite_difference(im):
    """im: (b, c, h, w) -> (b*c, 2, h-1, w-1), matching
    F.conv2d(im.reshape(b*c, 1, h, w), fixed finite-difference kernel)."""
    b, c, h, w = im.shape
    bc = b * c
    x = im.reshape(bc, h, w)
    if h < 2 or w < 2:
        # Degenerate valid-conv output (torch would error; return empty dims).
        return jnp.zeros((bc, 2, max(h - 1, 0), max(w - 1, 0)), im.dtype)

    itemsize = im.dtype.itemsize
    plane_bytes = h * w * itemsize
    if plane_bytes > _ROW_TILE_THRESHOLD and (h - 1) >= 8:
        return _fd_row_tiled(x, _pick_row_block(w, itemsize))
    # TODO(synk): planes that are huge only along w (tiny h) would need column
    # tiling with a 1-column halo; the whole-plane path is used for those.
    return _fd_whole_plane(x, _pick_tb(bc, h, w, itemsize))


# --------------------------------------------------------------------------
# Reference (pure JAX) and self-test
# --------------------------------------------------------------------------
def make_fd_kernel_weights():
    # The PyTorch module's (fixed) parameter values, used only by the reference.
    k = jnp.zeros((2, 1, 2, 2), jnp.float32)
    k = k.at[0, 0, 0, 0].set(1.0)
    k = k.at[0, 0, 1, 0].set(-1.0)
    k = k.at[1, 0, 0, 0].set(1.0)
    k = k.at[1, 0, 0, 1].set(-1.0)
    return k


def _reference(im, kernel):
    # Pure-JAX reference of F.conv2d(im.reshape(b*c,1,h,w), kernel), valid conv.
    b, c, h, w = im.shape
    x = im.reshape(b * c, h, w)
    out = []
    for o in range(2):
        acc = jnp.zeros((b * c, h - 1, w - 1), jnp.float32)
        for ki in range(2):
            for kj in range(2):
                acc = acc + kernel[o, 0, ki, kj] * x[:, ki:ki + h - 1, kj:kj + w - 1]
        out.append(acc)
    return jnp.stack(out, axis=1)


if __name__ == "__main__":
    key = jax.random.PRNGKey(0)
    k1, k2 = jax.random.split(key)
    weights = make_fd_kernel_weights()

    # Main (whole-plane) path at the module's typical small shapes.
    b, c, h, w = 2, 4, 16, 16
    im = jax.random.normal(k1, (b, c, h, w), dtype=jnp.float32)
    out = jax.block_until_ready(finite_difference(im))
    ref = _reference(im, weights)
    assert out.shape == (b * c, 2, h - 1, w - 1), out.shape
    assert jnp.allclose(out, ref, atol=1e-5, rtol=1e-5)

    # Row-tiled (large-plane) path, forced at a small shape for validation.
    b2, c2, h2, w2 = 1, 2, 33, 128
    im2 = jax.random.normal(k2, (b2, c2, h2, w2), dtype=jnp.float32)
    out2 = jax.block_until_ready(
        _fd_row_tiled(im2.reshape(b2 * c2, h2, w2), row_block=8))
    ref2 = _reference(im2, weights)
    assert out2.shape == (b2 * c2, 2, h2 - 1, w2 - 1), out2.shape
    assert jnp.allclose(out2, ref2, atol=1e-5, rtol=1e-5)

    print("KERNEL_OK")
</pallas_src>

<mosaic_0001>
module attributes {stable_mosaic.version = 11 : i64} {
  func.func @_fd_kernel_plane(%arg0: i32, %arg1: memref<4x16x16xf32, #tpu.memory_space<vmem>>, %arg2: memref<4x2x15x15xf32, #tpu.memory_space<vmem>>) attributes {dimension_semantics = [#tpu.dimension_semantics<parallel>], iteration_bounds = array<i64: 2>, scalar_prefetch = 0 : i64, scratch_operands = 0 : i64, tpu.core_type = #tpu.core_type<tc>, window_params = [{transform_indices = @transform_0, window_bounds = array<i64: 4, 16, 16>}, {transform_indices = @transform_1, window_bounds = array<i64: 4, 2, 15, 15>}]} {
    %c0 = arith.constant 0 : index
    %c0_0 = arith.constant 0 : index
    %c0_1 = arith.constant 0 : index
    %0 = vector.load %arg1[%c0, %c0_0, %c0_1] : memref<4x16x16xf32, #tpu.memory_space<vmem>>, vector<4x16x16xf32>
    %1 = vector.extract_strided_slice %0 {offsets = [0, 0, 0], sizes = [4, 15, 15], strides = [1, 1, 1]} : vector<4x16x16xf32> to vector<4x15x15xf32>
    %2 = vector.extract_strided_slice %0 {offsets = [0, 1, 0], sizes = [4, 15, 15], strides = [1, 1, 1]} : vector<4x16x16xf32> to vector<4x15x15xf32>
    %3 = arith.subf %1, %2 : vector<4x15x15xf32>
    %c0_2 = arith.constant 0 : index
    %c0_3 = arith.constant 0 : index
    %c0_4 = arith.constant 0 : index
    %c0_5 = arith.constant 0 : index
    %4 = vector.load %arg2[%c0_2, %c0_3, %c0_4, %c0_5] : memref<4x2x15x15xf32, #tpu.memory_space<vmem>>, vector<4x1x15x15xf32>
    %5 = vector.shape_cast %4 : vector<4x1x15x15xf32> to vector<4x15x15xf32>
    %6 = vector.shape_cast %3 : vector<4x15x15xf32> to vector<4x1x15x15xf32>
    tpu.vector_store %arg2[%c0_2, %c0_3, %c0_4, %c0_5], %6 {strides = array<i32>} : memref<4x2x15x15xf32, #tpu.memory_space<vmem>>, vector<4x1x15x15xf32>,
    %7 = vector.extract_strided_slice %0 {offsets = [0, 0, 1], sizes = [4, 15, 15], strides = [1, 1, 1]} : vector<4x16x16xf32> to vector<4x15x15xf32>
    %8 = arith.subf %1, %7 : vector<4x15x15xf32>
    %c0_6 = arith.constant 0 : index
    %c1 = arith.constant 1 : index
    %c0_7 = arith.constant 0 : index
    %c0_8 = arith.constant 0 : index
    %9 = vector.load %arg2[%c0_6, %c1, %c0_7, %c0_8] : memref<4x2x15x15xf32, #tpu.memory_space<vmem>>, vector<4x1x15x15xf32>
    %10 = vector.shape_cast %9 : vector<4x1x15x15xf32> to vector<4x15x15xf32>
    %11 = vector.shape_cast %8 : vector<4x15x15xf32> to vector<4x1x15x15xf32>
    tpu.vector_store %arg2[%c0_6, %c1, %c0_7, %c0_8], %11 {strides = array<i32>} : memref<4x2x15x15xf32, #tpu.memory_space<vmem>>, vector<4x1x15x15xf32>,
    return
  }
  func.func @transform_0(%arg0: i32) -> (i32, i32, i32) {
    %c0_i32 = arith.constant 0 : i32
    %c0_i32_0 = arith.constant 0 : i32
    %c0_i32_1 = arith.constant 0 : i32
    return %arg0, %c0_i32, %c0_i32_0 : i32, i32, i32
  }
  func.func @transform_1(%arg0: i32) -> (i32, i32, i32, i32) {
    %c0_i32 = arith.constant 0 : i32
    %c0_i32_0 = arith.constant 0 : i32
    %c0_i32_1 = arith.constant 0 : i32
    %c0_i32_2 = arith.constant 0 : i32
    return %arg0, %c0_i32, %c0_i32_0, %c0_i32_1 : i32, i32, i32, i32
  }
}

</mosaic_0001>

<bundles_post_ra>
// kernel: finite_difference.1
= control target key start
LH: loop header
LB: loop body
LE: loop exit
PB: predicated region body
PF: predicated region fallthrough
CT: control target
= control target key end

     0   :  { %6 = vsyncpa [#allocation3], 0  ;;  %s621_s0 = inlined_call_operand.hbm [shape: f32[8,16,16], index: 0, kind: input, shape index: {}]   ;;  %s622_s1 = inlined_call_operand.vmem [shape: f32[8,2,15,15], index: 1, kind: output, shape index: {}]  }
   0x1   :  { %8 = vsyncpa [#allocation3 + $0x1], 0  ;;  %s455_s6 = smov 0   ;;  %s457_s7 = smov 0  }
   0x2   :  { %s459_s8 = smov 0   ;;  %s461_s9 = smov 0  }
   0x3 LB: > { %s307_s10 = sadd.s32 4294967295, %s439_s9   ;;  %s475_s11 = sadd.s32 1, %s439_s9   ;;  %s439_s9 = sphi %s461_s9, %s629_s9   ;;  %s435_s8 = sphi %s459_s8, %s628_s8   ;;  %s431_s7 = sphi %s457_s7, %s627_s7   ;;  %s427_s6 = sphi %s455_s6, %s626_s6  }
   0x4   : > { %s18_s12 = ssub.s32 %s439_s9, %s475_s11  ;;  %s21_s13 = sadd.s32 1, %s435_s8 }
   0x5   : > { %p19_p0 = scmp.eq.s32.totalorder %s18_s12, 0  ;;  %p28_p1 = scmp.ne.s32.totalorder %s435_s8, %s431_s7 }
   0x6   : > { %p29_p2 = scmp.eq.s32.totalorder %s439_s9, 0  ;;  %p34_p3 = scmp.ne.s32.totalorder %s431_s7, %s427_s6 }
   0x7   : > { %s485_s14 = scalar_select %p19_p0, %s435_s8, %s21_s13  }
   0x8   : > { %p30_p4 = por %p29_p2, %p28_p1  ;;  %p35_p5 = scmp.eq.s32.totalorder %s307_s10, 0 }
   0x9   : > { %p339_p6 = scmp.lt.s32.totalorder %s439_s9, 2  ;;  %s84_s16 = sand.u32 1, %s435_s8  }
   0xa   : > { %p490_p7 = por %p35_p5, %p34_p3  ;;  %s311_s17 = sshll.u32 %s84_s16, 6 }
   0xb   : > { %s331_s18 = sshll.u32 %s439_s9, 10  ;;  %s88_s22 = scalar_lea.vmem [#allocation2], %s311_s17 }
   0xc   : > { %s499_s21 = scalar_lea.hbm %s621_s0, %s331_s18  ;;  %s96_s23 = sshll.u32 %s88_s22, 4  ;;  %s501_s23 = int_to_ptr.vmem [resolvable:$true] %s96_s23 }
   0xd   : > { %p503_p8 = pnand %p339_p6, %p30_p4  ;;  %s508_s25 = scalar_lea.sflag [#allocation3], %s84_s16 }
   0xe   : > { %s375_s26 = scalar_lea.hbm %s499_s21, 1024  ;;  %s380_s29 = scalar_lea.hbm %s621_s0, 2048 }
   0xf   : > { %p376_p10 = scmp.ne.s32.totalorder %s499_s21, %s375_s26  ;;  %p377_p11 = pneg %p503_p8 }
  0x10   : > { %p381_p0 = scmp.lt.u32.totalorder %s499_s21, %s621_s0  ;;  %p382_p1 = scmp.lt.u32.totalorder %s380_s29, %s375_s26 }
  0x11   : > { %p378_p12 = pnand %p377_p11, %p376_p10  ;;  %p384_p3 = scmp.lt.u32.totalorder %s375_s26, %s499_s21 }
  0x12   : > { %p383_p2 = por %p382_p1, %p381_p0 }
  0x13   : > { %p379_p13 = pneg %p378_p12 }
  0x14   : > { %p385_p4 = por %p384_p3, %p383_p2 }
  0x16   : > { %p386_p5 = pnand %p385_p4, %p379_p13 }
  0x18   : > { %389 = shalt.err (!%p386_p5)
}
  0x19   : > { %s390_s3 = scalar_lea.vmem %s501_s23, 1024  ;;  %s441_s4 = smov [#allocation2]  }
  0x1a   : > { %p391_p6 = scmp.ne.s32.totalorder %s501_s23, %s390_s3  ;;  %s395_s5 = sshll.u32 %s441_s4, 4  ;;  %s396_s5 = int_to_ptr.vmem [resolvable:$false] %s395_s5 }
  0x1b   : > { %s397_s6 = scalar_lea.vmem %s396_s5, 2048  ;;  %p398_p9 = scmp.lt.s32.totalorder %s501_s23, %s396_s5 }
  0x1c   : > { %p393_p10 = pnand %p391_p6, %p377_p11  ;;  %p399_p0 = scmp.lt.s32.totalorder %s397_s6, %s390_s3 }
  0x1e   : > { %p394_p12 = pneg %p393_p10  ;;  %p400_p1 = por %p399_p0, %p398_p9 }
  0x20   : > { %p401_p2 = pnand %p400_p1, %p394_p12 }
  0x22   : > { %404 = shalt.err (!%p401_p2)
}
  0x23   : > { %s442_s12 = smov 128   ;;  %s443_s13 = smov 8  }
  0x24   : > { %338 = dma.hbm_to_vmem [thread:$0]  (!%p503_p8), %s499_s21, 1024, %s501_s23, %s508_s25, %s442_s12, %s442_s12, %s443_s13  }
  0x25   : > { %p104_p11 = scmp.lt.s32.totalorder %s439_s9, 3  ;;  %p625_p13 = scmp.ge.s32.totalorder %s439_s9, 1 }
  0x27   : > { %p105_p3 = pnand %p625_p13, %p104_p11 }
  0x28   : > { %s110_s16 = sand.u32 (!%p105_p3), 1, %s431_s7  }
  0x29   : > { %108 = sbr.rel (%p105_p3) target bundleno = 181 (0xb5), region = 24  ;;  %s316_s17 = sshll.u32 (!%p105_p3), %s110_s16, 6 }
  0x2a   : > { %s111_s18 = scalar_lea.sflag (!%p105_p3), [#allocation3], %s110_s16  ;;  %s540_s19 = scalar_lea.vmem (!%p105_p3), [#allocation2], %s316_s17 }
  0x30   : > { %422 = dma.done.wait (%p490_p7), %s111_s18, 1024  }
  0x31   : > { %424 = vsyncadd (%p490_p7), %s111_s18, 4294966272  ;;  %s317_s20 = sshll.u32 %s307_s10, 2  ;;  %v144_v0 = vld [vmem:[%s540_s19 + $0x10] sm:$0xff]  ;;  %v142_v1 = vld [vmem:[%s540_s19] sm:$0xff]  ;;  %vm158_vm0 = vcmask 1046528   ;;  %s444_s15 = smov 127  }
  0x32   : > { %p136_p8 = scmp.lt.s32.totalorder %s317_s20, 7  ;;  %v145_v2 = vld [vmem:[%s540_s19 + $0x18] sm:$0xff]  ;;  %201 = vrot.lane.b32.xlu1 %v144_v0, %s444_s15  ;;  %v162_v3 = vrot.slane %v144_v0, 1  ;;  %197 = vrot.lane.b32.xlu0 %v142_v1, %s444_s15  ;;  %v159_v4 = vrot.slane %v142_v1, 1  ;;  %v143_v6 = vld [vmem:[%s540_s19 + $0x8] sm:$0xff]  ;;  %vm189_vm1 = vcmask 120832  }
  0x33   : > { %v163_v5 = vrot.slane %v145_v2, 1  ;;  %v147_v7 = vld [vmem:[%s540_s19 + $0x28] sm:$0xff]  ;;  %v160_v8 = vrot.slane %v143_v6, 1  ;;  %v146_v10 = vld [vmem:[%s540_s19 + $0x20] sm:$0xff]  ;;  %v149_v11 = vld [vmem:[%s540_s19 + $0x38] sm:$0xff]  ;;  %vm187_vm2 = vcmask 121856  }
  0x34   : > { %s631_s20 = smov (!%p136_p8, %s317_s20), 7  ;;  %v166_v9 = vrot.slane %v147_v7, 1  ;;  %v165_v14 = vrot.slane %v146_v10, 1  ;;  %v169_v15 = vrot.slane %v149_v11, 1  ;;  %v148_v20 = vld [vmem:[%s540_s19 + $0x30] sm:$0xff] }
  0x35   : > { %s332_s9 = sshll.u32 %s631_s20, 5  ;;  %v182_v12 = vsub.f32 %v145_v2, %v163_v5  ;;  %v164_v13 = vsel %vm158_vm0, %v162_v3, %v163_v5  ;;  %v180_v17 = vsub.f32 %v143_v6, %v160_v8  ;;  %v161_v18 = vsel %vm158_vm0, %v159_v4, %v160_v8 }
  0x36   : > { %v181_v16 = vsub.f32 %v144_v0, %v164_v13  ;;  %v184_v19 = vsub.f32 %v147_v7, %v166_v9  ;;  %203 = vrot.lane.b32.xlu1 %v145_v2, %s444_s15  ;;  %s567_s22 = scalar_lea.vmem %s622_s1, %s332_s9  ;;  %199 = vrot.lane.b32.xlu0 %v143_v6, %s444_s15  ;;  %v179_v21 = vsub.f32 %v142_v1, %v161_v18  ;;  %v168_v24 = vrot.slane %v148_v20, 1 }
  0x37   : > { %v167_v22 = vsel %vm158_vm0, %v165_v14, %v166_v9  ;;  %v186_v23 = vsub.f32 %v149_v11, %v169_v15  ;;  %190 = vst.msk [vmem:[%s567_s22 + $0x8] sm:$0x7f] %vm189_vm1, %v180_v17  ;;  %192 = vst.msk [vmem:[%s567_s22 + $0x28] sm:$0x7f] %vm189_vm1, %v182_v12 }
  0x38   : > { %v183_v25 = vsub.f32 %v146_v10, %v167_v22  ;;  %188 = vst.msk [vmem:[%s567_s22] sm:$0xff] %vm187_vm2, %v179_v21  ;;  %v170_v26 = vsel %vm158_vm0, %v168_v24, %v169_v15  ;;  %191 = vst.msk [vmem:[%s567_s22 + $0x20] sm:$0xff] %vm187_vm2, %v181_v16 }
  0x39   : > { %194 = vst.msk [vmem:[%s567_s22 + $0x48] sm:$0x7f] %vm189_vm1, %v184_v19  ;;  %v185_v27 = vsub.f32 %v148_v20, %v170_v26  ;;  %196 = vst.msk [vmem:[%s567_s22 + $0x68] sm:$0x7f] %vm189_vm1, %v186_v23 }
  0x3a   : > { %207 = vrot.lane.b32.xlu1 %v147_v7, %s444_s15  ;;  %205 = vrot.lane.b32.xlu0 %v146_v10, %s444_s15  ;;  %193 = vst.msk [vmem:[%s567_s22 + $0x40] sm:$0xff] %vm187_vm2, %v183_v25 }
  0x3b   : > { %195 = vst.msk [vmem:[%s567_s22 + $0x60] sm:$0xff] %vm187_vm2, %v185_v27 }
  0x3e   : > { %211 = vrot.lane.b32.xlu1 %v149_v11, %s444_s15  ;;  %209 = vrot.lane.b32.xlu0 %v148_v20, %s444_s15 }
  0xa4   : > { %v202_v28 = vpop.permute.xlu1 %201  ;;  %v198_v29 = vpop.permute.xlu0 %197 }
  0xa5   : > { %v223_v30 = vsub.f32 %v144_v0, %v202_v28  ;;  %v221_v31 = vsub.f32 %v142_v1, %v198_v29 }
  0xa7   : > { %320 = vst.msk [vmem:[%s567_s22 + $0x10] sm:$0xff] %vm187_vm2, %v221_v31  ;;  %322 = vst.msk [vmem:[%s567_s22 + $0x30] sm:$0xff] %vm187_vm2, %v223_v30 }
  0xa8   : > { %v204_v32 = vpop.permute.xlu1 %203  ;;  %v200_v33 = vpop.permute.xlu0 %199 }
  0xa9   : > { %v224_v34 = vsub.f32 %v145_v2, %v204_v32  ;;  %v222_v35 = vsub.f32 %v143_v6, %v200_v33 }
  0xab   : > { %321 = vst.msk [vmem:[%s567_s22 + $0x18] sm:$0x7f] %vm189_vm1, %v222_v35  ;;  %323 = vst.msk [vmem:[%s567_s22 + $0x38] sm:$0x7f] %vm189_vm1, %v224_v34 }
  0xac   : > { %v208_v36 = vpop.permute.xlu1 %207  ;;  %v206_v37 = vpop.permute.xlu0 %205 }
  0xad   : > { %v226_v38 = vsub.f32 %v147_v7, %v208_v36  ;;  %v225_v39 = vsub.f32 %v146_v10, %v206_v37 }
  0xaf   : > { %325 = vst.msk [vmem:[%s567_s22 + $0x58] sm:$0x7f] %vm189_vm1, %v226_v38 }
  0xb0   : > { %324 = vst.msk [vmem:[%s567_s22 + $0x50] sm:$0xff] %vm187_vm2, %v225_v39  ;;  %v212_v40 = vpop.permute.xlu1 %211  ;;  %v210_v41 = vpop.permute.xlu0 %209 }
  0xb1   : > { %v228_v42 = vsub.f32 %v149_v11, %v212_v40  ;;  %v227_v43 = vsub.f32 %v148_v20, %v210_v41 }
  0xb3   : > { %327 = vst.msk [vmem:[%s567_s22 + $0x78] sm:$0x7f] %vm189_vm1, %v228_v42 }
  0xb4   : > { %326 = vst.msk [vmem:[%s567_s22 + $0x70] sm:$0xff] %vm187_vm2, %v227_v43 }
  0xb5 PF: > { %p11_p7 = scmp.ge.s32.totalorder %s475_s11, 4   ;;  %s626_s6 = smov %s431_s7 }
  0xb6   : > { %s627_s7 = smov %s435_s8  ;;  %s628_s8 = smov %s485_s14 }
  0xb7   : > { %s629_s9 = smov %s475_s11  ;;  %13 = sbr.rel (!%p11_p7) target bundleno = 3 (0x3), region = 65 }
  0xbe   :  { %262 = vsyncpa [#allocation3], 1 }
  0xbf   :  { %264 = vsyncpa [#allocation3 + $0x1], 1 }

</bundles_post_ra>
